<compile_context>
chip_gen: v6e
topology: v6e:2x2x1
jax: 0.10.0
libtpu: 0.0.40
codegen_flags: <defaults>
</compile_context>

<pallas_src>
import jax
import jax.numpy as jnp
from jax.experimental import pallas as pl
from jax.experimental.pallas import tpu as pltpu


def _round_up(x, m):
    return ((x + m - 1) // m) * m


def _pad_to(x, shape):
    pads = [(0, t - s) for s, t in zip(x.shape, shape)]
    return jnp.pad(x, pads)


# ----------------------------------------------------------------------------
# Fused forward kernel: user tower (+ pooled-neighbor first layer) + item tower
# + dot-product score
# ----------------------------------------------------------------------------
def _make_fused_kernel(n_user_layers, n_item_layers):
    """Build the kernel body for a fixed (static) number of tower layers."""

    def kernel(*refs):
        idx = 0
        user_ref = refs[idx]; idx += 1      # [TB, Du]  bf16
        mean_ref = refs[idx]; idx += 1      # [TB, Di]  bf16 (pre-pooled)
        item_ref = refs[idx]; idx += 1      # [TB, Di]  bf16

        # user tower params: (w0_user, w0_neigh, b0), then (w, b) per layer
        w0u_ref, w0n_ref, b0_ref = refs[idx], refs[idx + 1], refs[idx + 2]
        idx += 3
        user_rest = []
        for _ in range(n_user_layers - 1):
            user_rest.append((refs[idx], refs[idx + 1]))
            idx += 2
        item_layers = []
        for _ in range(n_item_layers):
            item_layers.append((refs[idx], refs[idx + 1]))
            idx += 2
        o_ref = refs[idx]                   # [TB, 1]  f32

        f32 = jnp.float32
        bf16 = jnp.bfloat16

        # --- user tower; concat(user, mean) @ W0 == user @ W0_u + mean @ W0_n
        h = (jnp.dot(user_ref[...], w0u_ref[...], preferred_element_type=f32)
             + jnp.dot(mean_ref[...], w0n_ref[...], preferred_element_type=f32)
             + b0_ref[...])
        if n_user_layers > 1:
            h = jnp.maximum(h, 0.0)
        for li, (w_ref, b_ref) in enumerate(user_rest):
            h = (jnp.dot(h.astype(bf16), w_ref[...],
                         preferred_element_type=f32) + b_ref[...])
            if li < len(user_rest) - 1:
                h = jnp.maximum(h, 0.0)
        user_embeds = h                                          # [TB, E] f32

        # --- item tower ---
        g = item_ref[...]
        for li, (w_ref, b_ref) in enumerate(item_layers):
            g = (jnp.dot(g.astype(bf16), w_ref[...],
                         preferred_element_type=f32) + b_ref[...])
            if li < n_item_layers - 1:
                g = jnp.maximum(g, 0.0)
        item_embeds = g                                          # [TB, E] f32

        # --- DotProduct scoring; narrow (TB, 1) store ---
        score = jnp.sum(user_embeds * item_embeds, axis=-1, keepdims=True)
        o_ref[...] = score.astype(o_ref.dtype)

    return kernel


def fused_sparsenn_forward(user_p, mean_p, item_p, user_params, item_params,
                           n_user_layers, n_item_layers, tile_b):
    """Single pallas_call for the whole dense forward.

    user_p : [B_pad, Du] bf16   mean_p : [B_pad, Di] bf16
    item_p : [B_pad, Di] bf16   returns: [B_pad, 1]  f32
    """
    B_pad, Du = user_p.shape
    _, Di = mean_p.shape
    n_tiles = B_pad // tile_b

    kernel = _make_fused_kernel(n_user_layers, n_item_layers)

    in_specs = [
        pl.BlockSpec((tile_b, Du), lambda i: (i, 0)),
        pl.BlockSpec((tile_b, Di), lambda i: (i, 0)),
        pl.BlockSpec((tile_b, Di), lambda i: (i, 0)),
    ]
    params = list(user_params) + list(item_params)
    for p in params:
        # constant index_map -> weights/biases DMA'd once, VMEM-resident
        in_specs.append(pl.BlockSpec(p.shape, lambda i: (0, 0)))

    return pl.pallas_call(
        kernel,
        out_shape=jax.ShapeDtypeStruct((B_pad, 1), jnp.float32),
        grid=(n_tiles,),
        in_specs=in_specs,
        out_specs=pl.BlockSpec((tile_b, 1), lambda i: (i, 0)),
        compiler_params=pltpu.CompilerParams(
            dimension_semantics=("parallel",)),
    )(user_p, mean_p, item_p, *params)


# ----------------------------------------------------------------------------
# Parameter construction (deterministic) and plain-JAX glue
# ----------------------------------------------------------------------------
def init_linear(key, din, dout):
    kw, kb = jax.random.split(key)
    scale = 1.0 / jnp.sqrt(jnp.float32(din))
    w = jax.random.uniform(kw, (din, dout), jnp.float32, -scale, scale)
    b = jax.random.uniform(kb, (1, dout), jnp.float32, -scale, scale)
    return w, b


def init_embedding_tables(key, counts, dim):
    keys = jax.random.split(key, len(counts))
    return [0.05 * jax.random.normal(k, (c, dim), jnp.float32)
            for k, c in zip(keys, counts)]


def feature_model_forward(tables, ids):
    # ids: [B, num_feats] int32 -> concat of per-feature embeddings.
    embeds = [jnp.take(tbl, ids[:, f], axis=0) for f, tbl in enumerate(tables)]
    return jnp.concatenate(embeds, axis=-1)


class SparseNNPallas:
    def __init__(self, key, user_feat_counts, item_feat_counts,
                 feat_embed_dim, user_embed_hidden_dims,
                 item_embed_hidden_dims, user_embed_dim, tile_b=512):
        self.tile_b = tile_b
        k_ue, k_ie, k_us, k_it = jax.random.split(key, 4)
        self.user_tables = init_embedding_tables(k_ue, user_feat_counts,
                                                 feat_embed_dim)
        self.item_tables = init_embedding_tables(k_ie, item_feat_counts,
                                                 feat_embed_dim)
        self.Du = len(user_feat_counts) * feat_embed_dim
        self.Di = len(item_feat_counts) * feat_embed_dim

        bf16 = jnp.bfloat16

        # user tower (MeanSynthesis MLP over concat(user_feats, mean(neigh)))
        u_dims = ([self.Du + self.Di] + list(user_embed_hidden_dims)
                  + [user_embed_dim])
        u_keys = jax.random.split(k_us, len(u_dims) - 1)
        self.user_tower_raw = [init_linear(k, u_dims[i], u_dims[i + 1])
                               for i, k in enumerate(u_keys)]
        self.n_user_layers = len(self.user_tower_raw)
        # Split first-layer weight into user / neighbor halves (no concat in
        # kernel).  Weights bf16, biases f32.  No lane padding anywhere.
        w0, b0 = self.user_tower_raw[0]
        self.user_tower_kparams = [
            w0[:self.Du].astype(bf16),
            w0[self.Du:].astype(bf16),
            b0,
        ]
        for i in range(1, self.n_user_layers):
            w, b = self.user_tower_raw[i]
            self.user_tower_kparams += [w.astype(bf16), b]

        # item tower
        i_dims = [self.Di] + list(item_embed_hidden_dims) + [user_embed_dim]
        i_keys = jax.random.split(k_it, len(i_dims) - 1)
        self.item_tower_raw = [init_linear(k, i_dims[i], i_dims[i + 1])
                               for i, k in enumerate(i_keys)]
        self.n_item_layers = len(self.item_tower_raw)
        self.item_tower_kparams = []
        for w, b in self.item_tower_raw:
            self.item_tower_kparams += [w.astype(bf16), b]

    def _pick_tile(self, B):
        b16 = _round_up(B, 16)                 # bf16 sublane-friendly
        tile_b = min(self.tile_b, b16)
        # Prefer >= 2 grid tiles (v7x has 2 TensorCores) when batch allows.
        if b16 // tile_b < 2 and tile_b >= 32:
            tile_b = _round_up(b16 // 2, 16)
        return tile_b

    def forward(self, user_ids, item_ids, neighbor_item_ids):
        B = user_ids.shape[0]
        bf16 = jnp.bfloat16

        # sparse feature models (embedding lookup + concat) -- plain JAX glue.
        user_feats = feature_model_forward(self.user_tables, user_ids)
        item_feats = feature_model_forward(self.item_tables, item_ids)
        neigh_flat = feature_model_forward(self.item_tables, neighbor_item_ids)
        # Pre-pool the neighbors (f32 mean) OUTSIDE the kernel: kernel sees
        # a [B, Di] tensor instead of [B, N, Di].
        # (Implicit contract: neighbor ids are laid out [b0:n0..nN-1, b1:...].)
        neigh_mean = jnp.mean(neigh_flat.reshape(B, -1, self.Di), axis=1)

        # Pad only the batch dim to a sublane-aligned tile; cast to bf16.
        tile_b = self._pick_tile(B)
        B_pad = _round_up(B, tile_b)
        user_p = _pad_to(user_feats, (B_pad, self.Du)).astype(bf16)
        mean_p = _pad_to(neigh_mean, (B_pad, self.Di)).astype(bf16)
        item_p = _pad_to(item_feats, (B_pad, self.Di)).astype(bf16)

        out = fused_sparsenn_forward(
            user_p, mean_p, item_p,
            self.user_tower_kparams, self.item_tower_kparams,
            self.n_user_layers, self.n_item_layers, tile_b)
        return out[:B, 0]

    # pure-JAX f32 reference (raw params) for correctness checking.
    def reference_forward(self, user_ids, item_ids, neighbor_item_ids):
        def mlp(layers, x):
            for i, (w, b) in enumerate(layers):
                x = jnp.dot(x, w, precision=jax.lax.Precision.HIGHEST) + b
                if i < len(layers) - 1:
                    x = jnp.maximum(x, 0.0)
            return x

        B = user_ids.shape[0]
        user_feats = feature_model_forward(self.user_tables, user_ids)
        item_feats = feature_model_forward(self.item_tables, item_ids)
        neigh_flat = feature_model_forward(self.item_tables, neighbor_item_ids)
        neigh = neigh_flat.reshape(B, -1, self.Di)
        user_in = jnp.concatenate([user_feats, jnp.mean(neigh, axis=1)], -1)
        u = mlp(self.user_tower_raw, user_in)
        v = mlp(self.item_tower_raw, item_feats)
        return jnp.sum(u * v, axis=-1)


if __name__ == "__main__":
    key = jax.random.PRNGKey(0)
    k_params, k_u, k_i, k_n = jax.random.split(key, 4)

    # Small shapes consistent with the module semantics.
    B = 8
    NUM_NEIGHBORS = 5
    FEAT_EMBED_DIM = 16
    USER_FEAT_COUNTS = [10, 20, 30, 40]   # num_user_feats = 4
    ITEM_FEAT_COUNTS = [15, 25, 35]       # num_item_feats = 3
    USER_HIDDEN = [64, 32]
    ITEM_HIDDEN = [32]
    USER_EMBED_DIM = 16

    model = SparseNNPallas(
        k_params, USER_FEAT_COUNTS, ITEM_FEAT_COUNTS, FEAT_EMBED_DIM,
        USER_HIDDEN, ITEM_HIDDEN, USER_EMBED_DIM)

    user_ids = jnp.stack(
        [jax.random.randint(jax.random.fold_in(k_u, f), (B,), 0, c)
         for f, c in enumerate(USER_FEAT_COUNTS)], axis=1).astype(jnp.int32)
    item_ids = jnp.stack(
        [jax.random.randint(jax.random.fold_in(k_i, f), (B,), 0, c)
         for f, c in enumerate(ITEM_FEAT_COUNTS)], axis=1).astype(jnp.int32)
    neighbor_item_ids = jnp.stack(
        [jax.random.randint(jax.random.fold_in(k_n, f),
                            (B * NUM_NEIGHBORS,), 0, c)
         for f, c in enumerate(ITEM_FEAT_COUNTS)], axis=1).astype(jnp.int32)

    scores = model.forward(user_ids, item_ids, neighbor_item_ids)
    jax.block_until_ready(scores)
    assert scores.shape == (B,), scores.shape

    ref = model.reference_forward(user_ids, item_ids, neighbor_item_ids)
    # bf16 kernel vs f32 HIGHEST reference -> loose-but-meaningful tolerance.
    assert jnp.allclose(scores, ref, rtol=2e-2, atol=2e-2), (scores, ref)

    print("KERNEL_OK")
</pallas_src>

<mosaic_0001>
module attributes {stable_mosaic.version = 11 : i64} {
  func.func @kernel(%arg0: i32, %arg1: memref<16x64xbf16, #tpu.memory_space<vmem>>, %arg2: memref<16x48xbf16, #tpu.memory_space<vmem>>, %arg3: memref<16x48xbf16, #tpu.memory_space<vmem>>, %arg4: memref<64x64xbf16, #tpu.memory_space<vmem>>, %arg5: memref<48x64xbf16, #tpu.memory_space<vmem>>, %arg6: memref<1x64xf32, #tpu.memory_space<vmem>>, %arg7: memref<64x32xbf16, #tpu.memory_space<vmem>>, %arg8: memref<1x32xf32, #tpu.memory_space<vmem>>, %arg9: memref<32x16xbf16, #tpu.memory_space<vmem>>, %arg10: memref<1x16xf32, #tpu.memory_space<vmem>>, %arg11: memref<48x32xbf16, #tpu.memory_space<vmem>>, %arg12: memref<1x32xf32, #tpu.memory_space<vmem>>, %arg13: memref<32x16xbf16, #tpu.memory_space<vmem>>, %arg14: memref<1x16xf32, #tpu.memory_space<vmem>>, %arg15: memref<16x1xf32, #tpu.memory_space<vmem>>) attributes {dimension_semantics = [#tpu.dimension_semantics<parallel>], iteration_bounds = array<i64: 1>, scalar_prefetch = 0 : i64, scratch_operands = 0 : i64, tpu.core_type = #tpu.core_type<tc>, window_params = [{transform_indices = @transform_0, window_bounds = array<i64: 16, 64>}, {transform_indices = @transform_1, window_bounds = array<i64: 16, 48>}, {transform_indices = @transform_2, window_bounds = array<i64: 16, 48>}, {pipeline_mode = #tpu.pipeline_mode<synchronous>, transform_indices = @transform_3, window_bounds = array<i64: 64, 64>}, {pipeline_mode = #tpu.pipeline_mode<synchronous>, transform_indices = @transform_4, window_bounds = array<i64: 48, 64>}, {pipeline_mode = #tpu.pipeline_mode<synchronous>, transform_indices = @transform_5, window_bounds = array<i64: 1, 64>}, {pipeline_mode = #tpu.pipeline_mode<synchronous>, transform_indices = @transform_6, window_bounds = array<i64: 64, 32>}, {pipeline_mode = #tpu.pipeline_mode<synchronous>, transform_indices = @transform_7, window_bounds = array<i64: 1, 32>}, {pipeline_mode = #tpu.pipeline_mode<synchronous>, transform_indices = @transform_8, window_bounds = array<i64: 32, 16>}, {pipeline_mode = #tpu.pipeline_mode<synchronous>, transform_indices = @transform_9, window_bounds = array<i64: 1, 16>}, {pipeline_mode = #tpu.pipeline_mode<synchronous>, transform_indices = @transform_10, window_bounds = array<i64: 48, 32>}, {pipeline_mode = #tpu.pipeline_mode<synchronous>, transform_indices = @transform_11, window_bounds = array<i64: 1, 32>}, {pipeline_mode = #tpu.pipeline_mode<synchronous>, transform_indices = @transform_12, window_bounds = array<i64: 32, 16>}, {pipeline_mode = #tpu.pipeline_mode<synchronous>, transform_indices = @transform_13, window_bounds = array<i64: 1, 16>}, {transform_indices = @transform_14, window_bounds = array<i64: 16, 1>}]} {
    %c0 = arith.constant 0 : index
    %c0_0 = arith.constant 0 : index
    %0 = vector.load %arg1[%c0, %c0_0] : memref<16x64xbf16, #tpu.memory_space<vmem>>, vector<16x64xbf16>
    %c0_1 = arith.constant 0 : index
    %c0_2 = arith.constant 0 : index
    %1 = vector.load %arg4[%c0_1, %c0_2] : memref<64x64xbf16, #tpu.memory_space<vmem>>, vector<64x64xbf16>
    %cst = arith.constant dense<0.000000e+00> : vector<16x64xf32>
    %2 = tpu.matmul %0, %1, %cst {dimension_numbers = #tpu.dot_dimension_numbers<[1], [0], [0], [1], [0, 0, 1, 1], [], []>} : vector<16x64xbf16>, vector<64x64xbf16>, vector<16x64xf32> -> vector<16x64xf32>
    %c0_3 = arith.constant 0 : index
    %c0_4 = arith.constant 0 : index
    %3 = vector.load %arg2[%c0_3, %c0_4] : memref<16x48xbf16, #tpu.memory_space<vmem>>, vector<16x48xbf16>
    %c0_5 = arith.constant 0 : index
    %c0_6 = arith.constant 0 : index
    %4 = vector.load %arg5[%c0_5, %c0_6] : memref<48x64xbf16, #tpu.memory_space<vmem>>, vector<48x64xbf16>
    %cst_7 = arith.constant dense<0.000000e+00> : vector<16x64xf32>
    %5 = tpu.matmul %3, %4, %cst_7 {dimension_numbers = #tpu.dot_dimension_numbers<[1], [0], [0], [1], [0, 0, 1, 1], [], []>} : vector<16x48xbf16>, vector<48x64xbf16>, vector<16x64xf32> -> vector<16x64xf32>
    %6 = arith.addf %2, %5 : vector<16x64xf32>
    %c0_8 = arith.constant 0 : index
    %c0_9 = arith.constant 0 : index
    %7 = vector.load %arg6[%c0_8, %c0_9] : memref<1x64xf32, #tpu.memory_space<vmem>>, vector<1x64xf32>
    %8 = vector.broadcast %7 : vector<1x64xf32> to vector<16x64xf32>
    %9 = arith.addf %6, %8 : vector<16x64xf32>
    %cst_10 = arith.constant 0.000000e+00 : f32
    %10 = vector.broadcast %cst_10 : f32 to vector<16x64xf32>
    %11 = arith.maximumf %9, %10 : vector<16x64xf32>
    %12 = arith.truncf %11 : vector<16x64xf32> to vector<16x64xbf16>
    %c0_11 = arith.constant 0 : index
    %c0_12 = arith.constant 0 : index
    %13 = vector.load %arg7[%c0_11, %c0_12] : memref<64x32xbf16, #tpu.memory_space<vmem>>, vector<64x32xbf16>
    %cst_13 = arith.constant dense<0.000000e+00> : vector<16x32xf32>
    %14 = tpu.matmul %12, %13, %cst_13 {dimension_numbers = #tpu.dot_dimension_numbers<[1], [0], [0], [1], [0, 0, 1, 1], [], []>} : vector<16x64xbf16>, vector<64x32xbf16>, vector<16x32xf32> -> vector<16x32xf32>
    %c0_14 = arith.constant 0 : index
    %c0_15 = arith.constant 0 : index
    %15 = vector.load %arg8[%c0_14, %c0_15] : memref<1x32xf32, #tpu.memory_space<vmem>>, vector<1x32xf32>
    %16 = vector.broadcast %15 : vector<1x32xf32> to vector<16x32xf32>
    %17 = arith.addf %14, %16 : vector<16x32xf32>
    %cst_16 = arith.constant 0.000000e+00 : f32
    %18 = vector.broadcast %cst_16 : f32 to vector<16x32xf32>
    %19 = arith.maximumf %17, %18 : vector<16x32xf32>
    %20 = arith.truncf %19 : vector<16x32xf32> to vector<16x32xbf16>
    %c0_17 = arith.constant 0 : index
    %c0_18 = arith.constant 0 : index
    %21 = vector.load %arg9[%c0_17, %c0_18] : memref<32x16xbf16, #tpu.memory_space<vmem>>, vector<32x16xbf16>
    %cst_19 = arith.constant dense<0.000000e+00> : vector<16x16xf32>
    %22 = tpu.matmul %20, %21, %cst_19 {dimension_numbers = #tpu.dot_dimension_numbers<[1], [0], [0], [1], [0, 0, 1, 1], [], []>} : vector<16x32xbf16>, vector<32x16xbf16>, vector<16x16xf32> -> vector<16x16xf32>
    %c0_20 = arith.constant 0 : index
    %c0_21 = arith.constant 0 : index
    %23 = vector.load %arg10[%c0_20, %c0_21] : memref<1x16xf32, #tpu.memory_space<vmem>>, vector<1x16xf32>
    %24 = vector.broadcast %23 : vector<1x16xf32> to vector<16x16xf32>
    %25 = arith.addf %22, %24 : vector<16x16xf32>
    %c0_22 = arith.constant 0 : index
    %c0_23 = arith.constant 0 : index
    %26 = vector.load %arg3[%c0_22, %c0_23] : memref<16x48xbf16, #tpu.memory_space<vmem>>, vector<16x48xbf16>
    %c0_24 = arith.constant 0 : index
    %c0_25 = arith.constant 0 : index
    %27 = vector.load %arg11[%c0_24, %c0_25] : memref<48x32xbf16, #tpu.memory_space<vmem>>, vector<48x32xbf16>
    %cst_26 = arith.constant dense<0.000000e+00> : vector<16x32xf32>
    %28 = tpu.matmul %26, %27, %cst_26 {dimension_numbers = #tpu.dot_dimension_numbers<[1], [0], [0], [1], [0, 0, 1, 1], [], []>} : vector<16x48xbf16>, vector<48x32xbf16>, vector<16x32xf32> -> vector<16x32xf32>
    %c0_27 = arith.constant 0 : index
    %c0_28 = arith.constant 0 : index
    %29 = vector.load %arg12[%c0_27, %c0_28] : memref<1x32xf32, #tpu.memory_space<vmem>>, vector<1x32xf32>
    %30 = vector.broadcast %29 : vector<1x32xf32> to vector<16x32xf32>
    %31 = arith.addf %28, %30 : vector<16x32xf32>
    %cst_29 = arith.constant 0.000000e+00 : f32
    %32 = vector.broadcast %cst_29 : f32 to vector<16x32xf32>
    %33 = arith.maximumf %31, %32 : vector<16x32xf32>
    %34 = arith.truncf %33 : vector<16x32xf32> to vector<16x32xbf16>
    %c0_30 = arith.constant 0 : index
    %c0_31 = arith.constant 0 : index
    %35 = vector.load %arg13[%c0_30, %c0_31] : memref<32x16xbf16, #tpu.memory_space<vmem>>, vector<32x16xbf16>
    %cst_32 = arith.constant dense<0.000000e+00> : vector<16x16xf32>
    %36 = tpu.matmul %34, %35, %cst_32 {dimension_numbers = #tpu.dot_dimension_numbers<[1], [0], [0], [1], [0, 0, 1, 1], [], []>} : vector<16x32xbf16>, vector<32x16xbf16>, vector<16x16xf32> -> vector<16x16xf32>
    %c0_33 = arith.constant 0 : index
    %c0_34 = arith.constant 0 : index
    %37 = vector.load %arg14[%c0_33, %c0_34] : memref<1x16xf32, #tpu.memory_space<vmem>>, vector<1x16xf32>
    %38 = vector.broadcast %37 : vector<1x16xf32> to vector<16x16xf32>
    %39 = arith.addf %36, %38 : vector<16x16xf32>
    %40 = arith.mulf %25, %39 : vector<16x16xf32>
    %cst_35 = arith.constant dense<0.000000e+00> : vector<16xf32>
    %41 = vector.multi_reduction <add>, %40, %cst_35 [1] : vector<16x16xf32> to vector<16xf32>
    %42 = vector.shape_cast %41 : vector<16xf32> to vector<16x1xf32>
    %c0_36 = arith.constant 0 : index
    %c0_37 = arith.constant 0 : index
    %43 = vector.load %arg15[%c0_36, %c0_37] : memref<16x1xf32, #tpu.memory_space<vmem>>, vector<16x1xf32>
    tpu.vector_store %arg15[%c0_36, %c0_37], %42 {strides = array<i32>} : memref<16x1xf32, #tpu.memory_space<vmem>>, vector<16x1xf32>,
    return
  }
  func.func @transform_0(%arg0: i32) -> (i32, i32) {
    %c0_i32 = arith.constant 0 : i32
    %c0_i32_0 = arith.constant 0 : i32
    return %arg0, %c0_i32 : i32, i32
  }
  func.func @transform_1(%arg0: i32) -> (i32, i32) {
    %c0_i32 = arith.constant 0 : i32
    %c0_i32_0 = arith.constant 0 : i32
    return %arg0, %c0_i32 : i32, i32
  }
  func.func @transform_2(%arg0: i32) -> (i32, i32) {
    %c0_i32 = arith.constant 0 : i32
    %c0_i32_0 = arith.constant 0 : i32
    return %arg0, %c0_i32 : i32, i32
  }
  func.func @transform_3(%arg0: i32) -> (i32, i32) {
    %c0_i32 = arith.constant 0 : i32
    %c0_i32_0 = arith.constant 0 : i32
    %c0_i32_1 = arith.constant 0 : i32
    return %c0_i32, %c0_i32_0 : i32, i32
  }
  func.func @transform_4(%arg0: i32) -> (i32, i32) {
    %c0_i32 = arith.constant 0 : i32
    %c0_i32_0 = arith.constant 0 : i32
    %c0_i32_1 = arith.constant 0 : i32
    return %c0_i32, %c0_i32_0 : i32, i32
  }
  func.func @transform_5(%arg0: i32) -> (i32, i32) {
    %c0_i32 = arith.constant 0 : i32
    %c0_i32_0 = arith.constant 0 : i32
    %c0_i32_1 = arith.constant 0 : i32
    return %c0_i32, %c0_i32_0 : i32, i32
  }
  func.func @transform_6(%arg0: i32) -> (i32, i32) {
    %c0_i32 = arith.constant 0 : i32
    %c0_i32_0 = arith.constant 0 : i32
    %c0_i32_1 = arith.constant 0 : i32
    return %c0_i32, %c0_i32_0 : i32, i32
  }
  func.func @transform_7(%arg0: i32) -> (i32, i32) {
    %c0_i32 = arith.constant 0 : i32
    %c0_i32_0 = arith.constant 0 : i32
    %c0_i32_1 = arith.constant 0 : i32
    return %c0_i32, %c0_i32_0 : i32, i32
  }
  func.func @transform_8(%arg0: i32) -> (i32, i32) {
    %c0_i32 = arith.constant 0 : i32
    %c0_i32_0 = arith.constant 0 : i32
    %c0_i32_1 = arith.constant 0 : i32
    return %c0_i32, %c0_i32_0 : i32, i32
  }
  func.func @transform_9(%arg0: i32) -> (i32, i32) {
    %c0_i32 = arith.constant 0 : i32
    %c0_i32_0 = arith.constant 0 : i32
    %c0_i32_1 = arith.constant 0 : i32
    return %c0_i32, %c0_i32_0 : i32, i32
  }
  func.func @transform_10(%arg0: i32) -> (i32, i32) {
    %c0_i32 = arith.constant 0 : i32
    %c0_i32_0 = arith.constant 0 : i32
    %c0_i32_1 = arith.constant 0 : i32
    return %c0_i32, %c0_i32_0 : i32, i32
  }
  func.func @transform_11(%arg0: i32) -> (i32, i32) {
    %c0_i32 = arith.constant 0 : i32
    %c0_i32_0 = arith.constant 0 : i32
    %c0_i32_1 = arith.constant 0 : i32
    return %c0_i32, %c0_i32_0 : i32, i32
  }
  func.func @transform_12(%arg0: i32) -> (i32, i32) {
    %c0_i32 = arith.constant 0 : i32
    %c0_i32_0 = arith.constant 0 : i32
    %c0_i32_1 = arith.constant 0 : i32
    return %c0_i32, %c0_i32_0 : i32, i32
  }
  func.func @transform_13(%arg0: i32) -> (i32, i32) {
    %c0_i32 = arith.constant 0 : i32
    %c0_i32_0 = arith.constant 0 : i32
    %c0_i32_1 = arith.constant 0 : i32
    return %c0_i32, %c0_i32_0 : i32, i32
  }
  func.func @transform_14(%arg0: i32) -> (i32, i32) {
    %c0_i32 = arith.constant 0 : i32
    %c0_i32_0 = arith.constant 0 : i32
    return %arg0, %c0_i32 : i32, i32
  }
}

</mosaic_0001>

<bundles_post_ra>
// kernel: tpu_custom_call.1
= control target key start
LH: loop header
LB: loop body
LE: loop exit
PB: predicated region body
PF: predicated region fallthrough
CT: control target
= control target key end

     0   :  { %v681_v0 = vmov 0.0   ;;  %vm682_vm0 = vmmov 0   ;;  %vm89_vm1 = vcmask 392192   ;;  %vm163_vm2 = vcmask 523264   ;;  %s878_s4 = inlined_call_operand.vmem [shape: bf16[48,64], index: 4, kind: input, shape index: {}]   ;;  %s879_s3 = inlined_call_operand.vmem [shape: bf16[64,64], index: 3, kind: input, shape index: {}]   ;;  %s880_s1 = inlined_call_operand.vmem [shape: bf16[16,48], index: 1, kind: input, shape index: {}]   ;;  %s881_s0 = inlined_call_operand.vmem [shape: bf16[16,64], index: 0, kind: input, shape index: {}]   ;;  %s882_s6 = inlined_call_operand.vmem [shape: bf16[64,32], index: 6, kind: input, shape index: {}]   ;;  %s883_s5 = inlined_call_operand.vmem [shape: f32[1,64], index: 5, kind: input, shape index: {}]   ;;  %s884_s8 = inlined_call_operand.vmem [shape: bf16[32,16], index: 8, kind: input, shape index: {}]   ;;  %s885_s10 = inlined_call_operand.vmem [shape: bf16[48,32], index: 10, kind: input, shape index: {}]   ;;  %s886_s2 = inlined_call_operand.vmem [shape: bf16[16,48], index: 2, kind: input, shape index: {}]   ;;  %s887_s7 = inlined_call_operand.vmem [shape: f32[1,32], index: 7, kind: input, shape index: {}]   ;;  %s888_s12 = inlined_call_operand.vmem [shape: bf16[32,16], index: 12, kind: input, shape index: {}]   ;;  %s889_s11 = inlined_call_operand.vmem [shape: f32[1,32], index: 11, kind: input, shape index: {}]   ;;  %s890_s9 = inlined_call_operand.vmem [shape: f32[1,16], index: 9, kind: input, shape index: {}]   ;;  %s891_s13 = inlined_call_operand.vmem [shape: f32[1,16], index: 13, kind: input, shape index: {}]   ;;  %s892_s14 = inlined_call_operand.vmem [shape: f32[16,1], index: 14, kind: output, shape index: {}]  }
   0x1   :  { %598 = vmatprep.subr.bf16.mxu0 %v681_v0  ;;  %608 = vmatprep.subr.bf16.mxu1 %v681_v0  ;;  %v660_v1 = vld [vmem:[%s878_s4 + $0x10] sm:$0xff]   ;;  %v661_v2 = vld [vmem:[%s879_s3 + $0x18] sm:$0xff]   ;;  %v662_v3 = vld [vmem:[%s878_s4 + $0x8] sm:$0xff]   ;;  %vm329_vm3 = vcmask 261120   ;;  %vm528_vm4 = vcmask 130048   ;;  %vm535_vm5 = vcmask 7168  }
   0x2   :  { %604 = vmatprep.mubr.msk.bf16.mxu0 %vm682_vm0, %v681_v0  ;;  %616 = vmatprep.mubr.msk.bf16.mxu1 %vm682_vm0, %v681_v0  ;;  %v663_v4 = vld [vmem:[%s879_s3 + $0x10] sm:$0xff]   ;;  %v664_v5 = vld [vmem:[%s878_s4] sm:$0xff]   ;;  %v665_v6 = vld [vmem:[%s879_s3 + $0x8] sm:$0xff]  }
   0x3   :  { %599 = vmatpush3.bf16.msra.mxu0 %v660_v1  ;;  %609 = vmatpush3.bf16.msra.mxu1 %v661_v2  ;;  %v666_v7 = vld [vmem:[%s880_s1] sm:$0xff]   ;;  %v669_v10 = vld [vmem:[%s882_s6 + $0x18] sm:$0xff]   ;;  %v670_v11 = vld [vmem:[%s882_s6 + $0x10] sm:$0xff]  }
   0x4   :  { %600 = vmatprep.subr.bf16.mxu0 %v681_v0  ;;  %610 = vmatprep.subr.bf16.mxu1 %v681_v0  ;;  %v667_v8 = vld [vmem:[%s879_s3] sm:$0xff]   ;;  %v671_v12 = vld [vmem:[%s882_s6 + $0x8] sm:$0xff]   ;;  %v675_v41 = vld [vmem:[%s885_s10 + $0x10] sm:$0xff]  }
   0x5   :  { %v668_v9 = vld [vmem:[%s881_s0] sm:$0xff]   ;;  %v673_v30 = vld [vmem:[%s884_s8 + $0x8] sm:$0xff]  }
   0x6   :  { %v672_v13 = vld [vmem:[%s882_s6] sm:$0xff]   ;;  %v676_v43 = vld [vmem:[%s885_s10 + $0x8] sm:$0xff]  }
   0x7   :  { %601 = vmatpush3.bf16.msra.mxu0 %v662_v3  ;;  %611 = vmatpush3.bf16.msra.mxu1 %v663_v4  ;;  %v553_v20 = vld [vmem:[%s883_s5] ss:$0 sm:$0xff]  ;;  %v679_v46 = vld [vmem:[%s888_s12 + $0x8] sm:$0xff]  }
   0x8   :  { %602 = vmatprep.subr.bf16.mxu0 %v681_v0  ;;  %612 = vmatprep.subr.bf16.mxu1 %v681_v0  ;;  %v674_v31 = vld [vmem:[%s884_s8] sm:$0xff]  }
   0x9   :  { %v554_v32 = vld [vmem:[%s887_s7] ss:$0 sm:$0xff] }
   0xa   :  { %v677_v44 = vld [vmem:[%s885_s10] sm:$0xff]  }
   0xb   :  { %603 = vmatpush3.bf16.msra.mxu0 %v664_v5  ;;  %613 = vmatpush3.bf16.msra.mxu1 %v665_v6  ;;  %v678_v45 = vld [vmem:[%s886_s2] sm:$0xff]  }
   0xc   :  { %620 = vmatprep.subr.bf16.mxu0 %v681_v0  ;;  %614 = vmatprep.subr.bf16.mxu1 %v681_v0  ;;  %v680_v47 = vld [vmem:[%s888_s12] sm:$0xff]  }
   0xd   :  { %v564_v52 = vld [vmem:[%s889_s11] ss:$0 sm:$0xff] }
   0xe   :  { %605 = vmatmul.mubr.msk.bf16.vlgmr.msra.gmra.mxu0 %vm89_vm1, %v666_v7  ;;  %v560_v62 = vld [vmem:[%s890_s9] ss:$0 sm:$0xff] }
   0xf   :  { %628 = vmatprep.mubr.msk.bf16.mxu0 %vm682_vm0, %v681_v0  ;;  %615 = vmatpush3.bf16.msra.mxu1 %v667_v8  ;;  %v570_v63 = vld [vmem:[%s891_s13] ss:$0 sm:$0xff] }
  0x10   :  { %632 = vmatprep.subr.bf16.mxu1 %v681_v0  ;;  %621 = vmatpush3.bf16.msra.mxu0 %v669_v10 }
  0x11   :  { %622 = vmatprep.subr.bf16.mxu0 %v681_v0 }
  0x12   :  { %617 = vmatmul.mubr.msk.bf16.vlgmr.msra.gmra.mxu1 %vm163_vm2, %v668_v9 }
  0x13   :  { %636 = vmatprep.mubr.msk.bf16.mxu1 %vm682_vm0, %v681_v0  ;;  %633 = vmatpush3.bf16.msra.mxu1 %v673_v30 }
  0x14   :  { %623 = vmatpush3.bf16.msra.mxu0 %v670_v11  ;;  %634 = vmatprep.subr.bf16.mxu1 %v681_v0 }
  0x15   :  { %624 = vmatprep.subr.bf16.mxu0 %v681_v0 }
  0x17   :  { %635 = vmatpush3.bf16.msra.mxu1 %v674_v31 }
  0x18   :  { %625 = vmatpush3.bf16.msra.mxu0 %v671_v12  ;;  %640 = vmatprep.subr.bf16.mxu1 %v681_v0 }
  0x19   :  { %626 = vmatprep.subr.bf16.mxu0 %v681_v0 }
  0x1c   :  { %627 = vmatpush3.bf16.msra.mxu0 %v672_v13 }
  0x1d   :  { %650 = vmatprep.subr.bf16.mxu0 %v681_v0 }
  0xce   :  { %v127_v14 = vpop.f32.mrf.mxu0 }
  0xd0   :  { %v606_v15 = vpop.f32.mrf.mxu0 }
  0xd2   :  { %v130_v16 = vpop.f32.mrf.mxu0  ;;  %v201_v17 = vpop.f32.mrf.mxu1 }
  0xd3   :  { %v202_v18 = vadd.f32 %v201_v17, %v127_v14 }
  0xd4   :  { %v607_v19 = vpop.f32.mrf.mxu0  ;;  %v618_v21 = vpop.f32.mrf.mxu1 }
  0xd5   :  { %v215_v23 = vadd.f32 %v553_v20, %v202_v18 }
  0xd6   :  { %v204_v22 = vpop.f32.mrf.mxu1 }
  0xd7   :  { %v205_v24 = vadd.f32 %v204_v22, %v130_v16  ;;  %v217_v27 = vmax.f32 %v215_v23, 0.0 }
  0xd8   :  { %v619_v25 = vpop.f32.mrf.mxu1 }
  0xd9   :  { %v216_v26 = vadd.f32 %v553_v20, %v205_v24 }
  0xdb   :  { %v218_v28 = vmax.f32 %v216_v26, 0.0 }
  0xdd   :  { %v219_v29 = vpack.c.bf16 %v218_v28, %v217_v27 }
  0xdf   :  { %629 = vmatmul.mubr.msk.bf16.vlgmr.msra.gmra.mxu0 %vm163_vm2, %v219_v29 }
  0xe0   :  { %654 = vmatprep.mubr.msk.bf16.mxu0 %vm682_vm0, %v681_v0  ;;  %651 = vmatpush3.bf16.msra.mxu0 %v679_v46 }
  0xe1   :  { %652 = vmatprep.subr.bf16.mxu0 %v681_v0 }
  0xe4   :  { %653 = vmatpush3.bf16.msra.mxu0 %v680_v47 }
 0x19f   :  { %v296_v33 = vpop.f32.mrf.mxu0 }
 0x1a0   :  { %v297_v35 = vadd.f32 %v554_v32, %v296_v33 }
 0x1a1   :  { %v630_v34 = vpop.f32.mrf.mxu0 }
 0x1a2   :  { %v303_v39 = vmax.f32 %v297_v35, 0.0 }
 0x1a3   :  { %v299_v36 = vpop.f32.mrf.mxu0 }
 0x1a4   :  { %v300_v37 = vadd.f32 %v554_v32, %v299_v36 }
 0x1a5   :  { %v631_v38 = vpop.f32.mrf.mxu0 }
 0x1a6   :  { %v304_v40 = vmax.f32 %v300_v37, 0.0 }
 0x1a8   :  { %v305_v42 = vpack.c.bf16 %v304_v40, %v303_v39 }
 0x1aa   :  { %637 = vmatmul.mubr.msk.bf16.vlgmr.msra.gmra.mxu1 %vm329_vm3, %v305_v42 }
 0x1ab   :  { %641 = vmatpush3.bf16.msra.mxu1 %v675_v41  ;;  %646 = vmatprep.mubr.msk.bf16.mxu1 %vm682_vm0, %v681_v0 }
 0x1ac   :  { %642 = vmatprep.subr.bf16.mxu1 %v681_v0 }
 0x1af   :  { %643 = vmatpush3.bf16.msra.mxu1 %v676_v43 }
 0x1b0   :  { %644 = vmatprep.subr.bf16.mxu1 %v681_v0 }
 0x1b3   :  { %645 = vmatpush3.bf16.msra.mxu1 %v677_v44 }
 0x1b6   :  { %647 = vmatmul.mubr.msk.bf16.vlgmr.msra.gmra.mxu1 %vm89_vm1, %v678_v45 }
 0x26a   :  { %v367_v48 = vpop.f32.mrf.mxu1 }
 0x26b   :  { %v368_v1 = vadd.f32 %v560_v62, %v367_v48 }
 0x26c   :  { %v638_v49 = vpop.f32.mrf.mxu1 }
 0x26e   :  { %v370_v50 = vpop.f32.mrf.mxu1 }
 0x26f   :  { %v371_v6 = vadd.f32 %v560_v62, %v370_v50 }
 0x270   :  { %v639_v51 = vpop.f32.mrf.mxu1 }
 0x276   :  { %v449_v53 = vpop.f32.mrf.mxu1 }
 0x277   :  { %v450_v55 = vadd.f32 %v564_v52, %v449_v53 }
 0x278   :  { %v648_v54 = vpop.f32.mrf.mxu1 }
 0x279   :  { %v456_v59 = vmax.f32 %v450_v55, 0.0 }
 0x27a   :  { %v452_v56 = vpop.f32.mrf.mxu1 }
 0x27b   :  { %v453_v57 = vadd.f32 %v564_v52, %v452_v56 }
 0x27c   :  { %v649_v58 = vpop.f32.mrf.mxu1 }
 0x27d   :  { %v457_v60 = vmax.f32 %v453_v57, 0.0 }
 0x27f   :  { %v458_v61 = vpack.c.bf16 %v457_v60, %v456_v59 }
 0x281   :  { %655 = vmatmul.mubr.msk.bf16.vlgmr.msra.gmra.mxu0 %vm329_vm3, %v458_v61 }
 0x341   :  { %v519_v0 = vpop.f32.mrf.mxu0 }
 0x342   :  { %v520_v2 = vadd.f32 %v570_v63, %v519_v0 }
 0x343   :  { %v656_v3 = vpop.f32.mrf.mxu0 }
 0x344   :  { %v526_v4 = vmul.f32 %v520_v2, %v368_v1 }
 0x345   :  { %v522_v5 = vpop.f32.mrf.mxu0 }
 0x346   :  { %v523_v7 = vadd.f32 %v570_v63, %v522_v5  ;;  %v529_v8 = vsel %vm528_vm4, %v526_v4, 0.0 }
 0x347   :  { %530 = vadd.xlane.f32.xlu0 %v529_v8  ;;  %v657_v9 = vpop.f32.mrf.mxu0 }
 0x348   :  { %v527_v10 = vmul.f32 %v523_v7, %v371_v6 }
 0x34a   :  { %v532_v11 = vsel %vm528_vm4, %v527_v10, 0.0 }
 0x34b   :  { %533 = vadd.xlane.f32.xlu0 %v532_v11 }
 0x3d0   :  { %v531_v12 = vpop.xlane.xlu0 %530 }
 0x3d1   :  { %536 = vst.msk [vmem:[%s892_s14] sm:$0xff] %vm535_vm5, %v531_v12 }
 0x3d4   :  { %v534_v13 = vpop.xlane.xlu0 %533 }
 0x3d5   :  { %537 = vst.msk [vmem:[%s892_s14 + $0x8] sm:$0xff] %vm535_vm5, %v534_v13 }

</bundles_post_ra>
